<compile_context>
chip_gen: v5e
topology: v5e:2x2
jax: 0.10.0
libtpu: 0.0.40
codegen_flags: <defaults>
</compile_context>

<pallas_src>
import functools

import jax
import jax.numpy as jnp
from jax.experimental import pallas as pl
from jax.experimental.pallas import tpu as pltpu

# leave headroom under v7x's 64 MiB physical VMEM; plenty for v5e/v6e too
_VMEM_LIMIT = 48 * 1024 * 1024


# --------------------------------------------------------------------------- #
# Kernel 1: VarianceAdaptorBlock (fused stack of P predictors)
# --------------------------------------------------------------------------- #
def _vblock_kernel(x_ref, keep_ref, w1_ref, b1_ref, g1_ref, be1_ref,
                   w2_ref, b2_ref, g2_ref, be2_ref, wl_ref, bl_ref,
                   o_ref, pad_ref, *, kernel_size):
    T = x_ref.shape[1]
    D = x_ref.shape[2]
    K = kernel_size
    pad = (K - 1) // 2
    p = pl.program_id(1)                      # which predictor of the stacked set

    # Zero the halo rows of the shared conv staging scratch once per invocation.
    if pad > 0:
        halo = jnp.zeros((pad, D), jnp.float32)
        pad_ref[pl.ds(0, pad), :] = halo
        pad_ref[pl.ds(pad + T, pad), :] = halo

    def conv_relu_ln(h, w_ref_, b_ref_, g_ref_, beta_ref_):
        # Stage h into the zero-padded scratch; each conv tap is then a static slice
        # (no concat-with-zeros copies).
        pad_ref[pl.ds(pad, T), :] = h
        acc = jnp.zeros((T, D), jnp.float32)
        for k in range(K):                    # static unroll over taps
            tap = pad_ref[pl.ds(k, T), :].astype(jnp.bfloat16)   # bf16 MXU operand
            acc = acc + jnp.dot(tap, w_ref_[0, k],
                                preferred_element_type=jnp.float32)
        acc = jnp.maximum(acc + b_ref_[0], 0.0)                  # bias + ReLU
        # LayerNorm, single-pass stats in f32 (eps = 1e-5, matching nn.LayerNorm)
        mu = jnp.mean(acc, axis=-1, keepdims=True)
        ms = jnp.mean(acc * acc, axis=-1, keepdims=True)
        var = jnp.maximum(ms - mu * mu, 0.0)
        return (acc - mu) * jax.lax.rsqrt(var + 1e-5) * g_ref_[0] + beta_ref_[0]

    h = conv_relu_ln(x_ref[0], w1_ref, b1_ref, g1_ref, be1_ref)
    # dropout: identity (eval-mode semantics)
    h = conv_relu_ln(h, w2_ref, b2_ref, g2_ref, be2_ref)

    # Linear(D -> 1), emitted directly as a lane-dense (1, T) row: wl is padded to
    # (8, D) sublanes (row 0 holds the real weight) and contracted against h's D axis.
    proj = jax.lax.dot_general(
        wl_ref[0], h.astype(jnp.bfloat16),
        dimension_numbers=(((1,), (1,)), ((), ())),
        preferred_element_type=jnp.float32)                      # (8, T)
    row = (proj[0:1, :] + bl_ref[0]) * keep_ref[0]               # masked_fill(mask, 0.0)
    o_ref[0, pl.ds(p, 1), :] = row


def variance_block(pstack, x, keep):
    """pstack: predictor params stacked along a leading P axis.
    x: (B, T, D) f32, keep: (B, 1, T) f32 (1.0 = valid, 0.0 = padded) -> (B, P, T) f32."""
    B, T, D = x.shape
    P, K = pstack['w1'].shape[0], pstack['w1'].shape[1]
    assert K % 2 == 1, "only odd kernel_size gives 'same' Conv1d padding (as in the model)"
    # TODO(synk): for production mel lengths on v7x (64 MiB VMEM), tile T into the grid
    # with halo recompute instead of keeping whole (T, D) slabs resident.

    vec = lambda: pl.BlockSpec((1, 1, D), lambda b, p: (p, 0, 0))
    out = pl.pallas_call(
        functools.partial(_vblock_kernel, kernel_size=K),
        out_shape=jax.ShapeDtypeStruct((B, P, T), jnp.float32),
        grid=(B, P),
        in_specs=[
            pl.BlockSpec((1, T, D), lambda b, p: (b, 0, 0)),        # x (reused across P)
            pl.BlockSpec((1, 1, T), lambda b, p: (b, 0, 0)),        # keep mask (lane-dense)
            pl.BlockSpec((1, K, D, D), lambda b, p: (p, 0, 0, 0)),  # conv1 weight (bf16)
            vec(), vec(), vec(),                                    # b1, gamma1, beta1
            pl.BlockSpec((1, K, D, D), lambda b, p: (p, 0, 0, 0)),  # conv2 weight (bf16)
            vec(), vec(), vec(),                                    # b2, gamma2, beta2
            pl.BlockSpec((1, 8, D), lambda b, p: (p, 0, 0)),        # linear weight (padded)
            pl.BlockSpec((1, 1, 1), lambda b, p: (p, 0, 0)),        # linear bias
        ],
        # Output block is revisited across the P axis (each step writes its own row),
        # so that axis is "arbitrary"; B is "parallel" (megacore shardable).
        out_specs=pl.BlockSpec((1, P, T), lambda b, p: (b, 0, 0)),
        scratch_shapes=[pltpu.VMEM((T + 2 * ((K - 1) // 2), D), jnp.float32)],
        compiler_params=pltpu.CompilerParams(
            dimension_semantics=("parallel", "arbitrary"),
            vmem_limit_bytes=_VMEM_LIMIT),
    )(x, keep, pstack['w1'], pstack['b1'], pstack['g1'], pstack['be1'],
      pstack['w2'], pstack['b2'], pstack['g2'], pstack['be2'],
      pstack['wl'], pstack['bl'])
    return out                                                      # (B, P, T)


# --------------------------------------------------------------------------- #
# Kernel 2: LengthRegulator (expand tokens by duration, pad/crop to max_len)
# --------------------------------------------------------------------------- #
def _length_reg_kernel(bounds_ref, x_ref, o_ref, *, max_len):
    bd = bounds_ref[0]                                   # (2, T): row0=start, row1=end
    T = bd.shape[1]
    start = bd[0:1, :]                                   # exclusive cumsum
    end = bd[1:2, :]                                     # inclusive cumsum
    frame = jax.lax.broadcasted_iota(jnp.int32, (max_len, T), 0).astype(jnp.float32)
    gate = jnp.where((frame >= start) & (frame < end), 1.0, 0.0)   # (max_len, T) one-hot
    # NOTE: comparisons are exact while cumulative durations stay below 2^24 (f32).
    o_ref[0] = jnp.dot(gate, x_ref[0], preferred_element_type=jnp.float32)


def length_regulate(x, durations, max_len):
    """x: (B, T, D), durations: (B, T) whole numbers -> (B, max_len, D)."""
    B, T, D = x.shape
    dur = durations.astype(jnp.float32)
    csum = jnp.cumsum(dur, axis=-1)                      # cumsum in the wrapper (cheap)
    bounds = jnp.stack([csum - dur, csum], axis=1)       # (B, 2, T)
    return pl.pallas_call(
        functools.partial(_length_reg_kernel, max_len=max_len),
        out_shape=jax.ShapeDtypeStruct((B, max_len, D), jnp.float32),
        grid=(B,),
        in_specs=[pl.BlockSpec((1, 2, T), lambda b: (b, 0, 0)),
                  pl.BlockSpec((1, T, D), lambda b: (b, 0, 0))],
        out_specs=pl.BlockSpec((1, max_len, D), lambda b: (b, 0, 0)),
        compiler_params=pltpu.CompilerParams(
            dimension_semantics=("parallel",), vmem_limit_bytes=_VMEM_LIMIT),
    )(bounds, x)


# --------------------------------------------------------------------------- #
# Kernel 3: bucketize + fused pitch/energy embedding gather + residual add
# --------------------------------------------------------------------------- #
def _embed_add_kernel(x_ref, v_ref, bins_ref, tab_ref, o_ref):
    x = x_ref[0]                                          # (T, D)
    T = x.shape[0]
    v = v_ref[0]                                          # (T, 2): [:,0]=pitch, [:,1]=energy
    bins = bins_ref[...]                                  # (2, 256), lane 255 = +inf sentinel
    pv, ev = v[:, 0:1], v[:, 1:2]                         # (T, 1) each
    pb, eb = bins[0:1, :], bins[1:2, :]                   # (1, 256) each
    # torch.bucketize(v, bins, right=False) == #(bins < v); +inf sentinel never counts.
    pidx = jnp.sum((pb < pv).astype(jnp.int32), axis=-1, keepdims=True)   # (T, 1)
    eidx = jnp.sum((eb < ev).astype(jnp.int32), axis=-1, keepdims=True)
    ids = jax.lax.broadcasted_iota(jnp.int32, (T, 512), 1)
    onehot = jnp.where((ids == pidx) | (ids == (eidx + 256)), 1.0, 0.0)   # (T, 512)
    # Gathers kept in f32 so embedding values match the table exactly.
    o_ref[0] = x + jnp.dot(onehot, tab_ref[...], preferred_element_type=jnp.float32)


def embed_add(x, pitch_vals, energy_vals, pbins, ebins, ptab, etab):
    B, T, D = x.shape
    vals = jnp.stack([pitch_vals, energy_vals], axis=-1).astype(jnp.float32)   # (B, T, 2)
    sentinel = jnp.full((1,), jnp.inf, jnp.float32)
    bins = jnp.stack([jnp.concatenate([pbins.reshape(-1).astype(jnp.float32), sentinel]),
                      jnp.concatenate([ebins.reshape(-1).astype(jnp.float32), sentinel])],
                     axis=0)                                                   # (2, 256)
    tab = jnp.concatenate([ptab, etab], axis=0)                                # (512, D)
    return pl.pallas_call(
        _embed_add_kernel,
        out_shape=jax.ShapeDtypeStruct((B, T, D), jnp.float32),
        grid=(B,),
        in_specs=[
            pl.BlockSpec((1, T, D), lambda b: (b, 0, 0)),
            pl.BlockSpec((1, T, 2), lambda b: (b, 0, 0)),
            pl.BlockSpec((2, 256), lambda b: (0, 0)),
            pl.BlockSpec((512, D), lambda b: (0, 0)),
        ],
        out_specs=pl.BlockSpec((1, T, D), lambda b: (b, 0, 0)),
        compiler_params=pltpu.CompilerParams(
            dimension_semantics=("parallel",), vmem_limit_bytes=_VMEM_LIMIT),
    )(x, vals, bins, tab)


# --------------------------------------------------------------------------- #
# Glue: full VarianceAdaptor forward
# --------------------------------------------------------------------------- #
def get_mask_from_lengths(lengths, max_len):
    ids = jnp.arange(max_len)
    return ids[None, :] >= lengths[:, None]              # True = padded


def _stack_blocks(blocks):
    """Stack per-predictor params along a new leading P axis; pad the (P,1,D) linear
    weight to (P,8,D) so the final projection is a full 8-sublane MXU tile."""
    out = {k: jnp.stack([b[k] for b in blocks], axis=0) for k in blocks[0]}
    P, _, D = out['wl'].shape
    out['wl'] = jnp.concatenate(
        [out['wl'], jnp.zeros((P, 7, D), out['wl'].dtype)], axis=1)
    return out


def variance_adaptor_forward(params, x, src_mask, mel_mask=None, max_len=None,
                             duration_target=None, pitch_target=None,
                             energy_target=None, duration_alpha=1.0,
                             pitch_alpha=1.0, energy_alpha=1.0):
    src_keep = (~src_mask).astype(jnp.float32)[:, None, :]          # (B, 1, T_src)
    dur_stack = _stack_blocks([params['duration_predictor']])
    log_duration_predicted = variance_block(dur_stack, x, src_keep)[:, 0, :]

    if duration_target is not None:
        round_duration = duration_target
        x_mel = length_regulate(x, round_duration.astype(jnp.float32), max_len)
    else:
        # TODO(synk): dynamic mel length is clamped to the static max_len (torch pads to
        # the true expanded length); with a static output buffer this is the closest
        # shape-preserving equivalent.
        round_duration = jnp.clip(
            jnp.round(jnp.exp(log_duration_predicted) - 1.0) * duration_alpha, 0.0)
        x_mel = length_regulate(x, round_duration, max_len)
        mel_length = jnp.minimum(jnp.sum(round_duration, axis=-1),
                                 max_len).astype(jnp.int32)
        mel_mask = get_mask_from_lengths(mel_length, max_len)

    mel_keep = (~mel_mask).astype(jnp.float32)[:, None, :]
    # pitch + energy predictors fused into one pallas_call (x_mel read once per batch row)
    pe_stack = _stack_blocks([params['pitch_predictor'], params['energy_predictor']])
    pe = variance_block(pe_stack, x_mel, mel_keep)                   # (B, 2, max_len)
    pitch_prediction = pe[:, 0, :]
    energy_prediction = pe[:, 1, :]

    pitch_vals = (pitch_target if pitch_target is not None
                  else pitch_prediction * pitch_alpha)
    energy_vals = (energy_target if energy_target is not None
                   else energy_prediction * energy_alpha)

    x_out = embed_add(x_mel, pitch_vals, energy_vals,
                      params['pitch_quant_bins'], params['energy_quant_bins'],
                      params['pitch_embedding'], params['energy_embedding'])

    return ((x_out, log_duration_predicted, pitch_prediction, energy_prediction),
            (round_duration, mel_mask))


# --------------------------------------------------------------------------- #
# Demo
# --------------------------------------------------------------------------- #
if __name__ == "__main__":
    B, T_SRC, D, K, MAX_LEN = 2, 16, 128, 3, 32          # D lane-dense (multiple of 128)

    key = jax.random.PRNGKey(0)
    k_dur, k_pitch, k_energy, k_pe, k_ee, k_x, k_pt, k_et = jax.random.split(key, 8)

    def init_block(k):
        k1, k2, k3 = jax.random.split(k, 3)
        return dict(
            w1=(0.1 * jax.random.normal(k1, (K, D, D), jnp.float32)).astype(jnp.bfloat16),
            b1=jnp.zeros((1, D), jnp.float32),
            g1=jnp.ones((1, D), jnp.float32),
            be1=jnp.zeros((1, D), jnp.float32),
            w2=(0.1 * jax.random.normal(k2, (K, D, D), jnp.float32)).astype(jnp.bfloat16),
            b2=jnp.zeros((1, D), jnp.float32),
            g2=jnp.ones((1, D), jnp.float32),
            be2=jnp.zeros((1, D), jnp.float32),
            wl=(0.1 * jax.random.normal(k3, (1, D), jnp.float32)).astype(jnp.bfloat16),
            bl=jnp.zeros((1, 1), jnp.float32),
        )

    pitch_min, pitch_max, energy_min, energy_max = -2.0, 8.0, 0.0, 5.0
    params = dict(
        duration_predictor=init_block(k_dur),
        pitch_predictor=init_block(k_pitch),
        energy_predictor=init_block(k_energy),
        pitch_quant_bins=jnp.linspace(pitch_min, pitch_max, 255, dtype=jnp.float32),
        energy_quant_bins=jnp.linspace(energy_min, energy_max, 255, dtype=jnp.float32),
        pitch_embedding=0.1 * jax.random.normal(k_pe, (256, D), jnp.float32),
        energy_embedding=0.1 * jax.random.normal(k_ee, (256, D), jnp.float32),
    )

    x = jax.random.normal(k_x, (B, T_SRC, D), jnp.float32)
    src_lens = jnp.array([16, 13], jnp.int32)
    src_mask = jnp.arange(T_SRC)[None, :] >= src_lens[:, None]        # True = padded

    # ---------------- teacher-forcing path ----------------
    duration_target = jnp.where(jnp.arange(T_SRC)[None, :] < src_lens[:, None], 2, 0)
    mel_lens = jnp.minimum(jnp.sum(duration_target, axis=-1), MAX_LEN)
    mel_mask = get_mask_from_lengths(mel_lens, MAX_LEN)
    pitch_target = jax.random.uniform(k_pt, (B, MAX_LEN), jnp.float32,
                                      pitch_min, pitch_max)
    energy_target = jax.random.uniform(k_et, (B, MAX_LEN), jnp.float32,
                                       energy_min, energy_max)

    (x_out, log_d, pitch_pred, energy_pred), (round_dur, out_mask) = \
        variance_adaptor_forward(
            params, x, src_mask, mel_mask=mel_mask, max_len=MAX_LEN,
            duration_target=duration_target,
            pitch_target=pitch_target, energy_target=energy_target)
    jax.block_until_ready((x_out, log_d, pitch_pred, energy_pred, round_dur, out_mask))

    assert x_out.shape == (B, MAX_LEN, D)
    assert log_d.shape == (B, T_SRC)
    assert pitch_pred.shape == (B, MAX_LEN)
    assert energy_pred.shape == (B, MAX_LEN)

    # ---------------- inference path (predicted durations) ----------------
    (x_out2, log_d2, pitch_pred2, energy_pred2), (round_dur2, mel_mask2) = \
        variance_adaptor_forward(params, x, src_mask, max_len=MAX_LEN)
    jax.block_until_ready((x_out2, log_d2, pitch_pred2, energy_pred2,
                           round_dur2, mel_mask2))

    assert x_out2.shape == (B, MAX_LEN, D)
    assert round_dur2.shape == (B, T_SRC)
    assert mel_mask2.shape == (B, MAX_LEN)

    print("KERNEL_OK")
</pallas_src>

<mosaic_0001>
module attributes {stable_mosaic.version = 11 : i64} {
  func.func @_vblock_kernel(%arg0: i32, %arg1: i32, %arg2: memref<1x16x128xf32, #tpu.memory_space<vmem>>, %arg3: memref<1x1x16xf32, #tpu.memory_space<vmem>>, %arg4: memref<1x3x128x128xbf16, #tpu.memory_space<vmem>>, %arg5: memref<1x1x128xf32, #tpu.memory_space<vmem>>, %arg6: memref<1x1x128xf32, #tpu.memory_space<vmem>>, %arg7: memref<1x1x128xf32, #tpu.memory_space<vmem>>, %arg8: memref<1x3x128x128xbf16, #tpu.memory_space<vmem>>, %arg9: memref<1x1x128xf32, #tpu.memory_space<vmem>>, %arg10: memref<1x1x128xf32, #tpu.memory_space<vmem>>, %arg11: memref<1x1x128xf32, #tpu.memory_space<vmem>>, %arg12: memref<1x8x128xbf16, #tpu.memory_space<vmem>>, %arg13: memref<1x1x1xf32, #tpu.memory_space<vmem>>, %arg14: memref<1x1x16xf32, #tpu.memory_space<vmem>>, %arg15: memref<18x128xf32, #tpu.memory_space<vmem>>) attributes {dimension_semantics = [#tpu.dimension_semantics<parallel>, #tpu.dimension_semantics<arbitrary>], iteration_bounds = array<i64: 2, 1>, scalar_prefetch = 0 : i64, scratch_operands = 1 : i64, tpu.core_type = #tpu.core_type<tc>, window_params = [{transform_indices = @transform_0, window_bounds = array<i64: 1, 16, 128>}, {transform_indices = @transform_1, window_bounds = array<i64: 1, 1, 16>}, {transform_indices = @transform_2, window_bounds = array<i64: 1, 3, 128, 128>}, {transform_indices = @transform_3, window_bounds = array<i64: 1, 1, 128>}, {transform_indices = @transform_4, window_bounds = array<i64: 1, 1, 128>}, {transform_indices = @transform_5, window_bounds = array<i64: 1, 1, 128>}, {transform_indices = @transform_6, window_bounds = array<i64: 1, 3, 128, 128>}, {transform_indices = @transform_7, window_bounds = array<i64: 1, 1, 128>}, {transform_indices = @transform_8, window_bounds = array<i64: 1, 1, 128>}, {transform_indices = @transform_9, window_bounds = array<i64: 1, 1, 128>}, {transform_indices = @transform_10, window_bounds = array<i64: 1, 8, 128>}, {transform_indices = @transform_11, window_bounds = array<i64: 1, 1, 1>}, {transform_indices = @transform_12, window_bounds = array<i64: 1, 1, 16>}]} {
    %cst = arith.constant 0.000000e+00 : f32
    %0 = vector.broadcast %cst : f32 to vector<1x128xf32>
    %c0 = arith.constant 0 : index
    %c0_0 = arith.constant 0 : index
    %1 = vector.load %arg15[%c0, %c0_0] : memref<18x128xf32, #tpu.memory_space<vmem>>, vector<1x128xf32>
    tpu.vector_store %arg15[%c0, %c0_0], %0 {strides = array<i32>} : memref<18x128xf32, #tpu.memory_space<vmem>>, vector<1x128xf32>,
    %c17 = arith.constant 17 : index
    %c0_1 = arith.constant 0 : index
    %2 = vector.load %arg15[%c17, %c0_1] : memref<18x128xf32, #tpu.memory_space<vmem>>, vector<1x128xf32>
    tpu.vector_store %arg15[%c17, %c0_1], %0 {strides = array<i32>} : memref<18x128xf32, #tpu.memory_space<vmem>>, vector<1x128xf32>,
    %c0_2 = arith.constant 0 : index
    %c0_3 = arith.constant 0 : index
    %c0_4 = arith.constant 0 : index
    %3 = vector.load %arg2[%c0_2, %c0_3, %c0_4] : memref<1x16x128xf32, #tpu.memory_space<vmem>>, vector<1x16x128xf32>
    %4 = vector.shape_cast %3 : vector<1x16x128xf32> to vector<16x128xf32>
    %c1 = arith.constant 1 : index
    %c0_5 = arith.constant 0 : index
    %5 = vector.load %arg15[%c1, %c0_5] : memref<18x128xf32, #tpu.memory_space<vmem>>, vector<16x128xf32>
    tpu.vector_store %arg15[%c1, %c0_5], %4 {strides = array<i32>} : memref<18x128xf32, #tpu.memory_space<vmem>>, vector<16x128xf32>,
    %cst_6 = arith.constant 0.000000e+00 : f32
    %6 = vector.broadcast %cst_6 : f32 to vector<16x128xf32>
    %c0_7 = arith.constant 0 : index
    %c0_8 = arith.constant 0 : index
    %7 = vector.load %arg15[%c0_7, %c0_8] : memref<18x128xf32, #tpu.memory_space<vmem>>, vector<16x128xf32>
    %8 = arith.truncf %7 : vector<16x128xf32> to vector<16x128xbf16>
    %c0_9 = arith.constant 0 : index
    %c0_10 = arith.constant 0 : index
    %c0_11 = arith.constant 0 : index
    %c0_12 = arith.constant 0 : index
    %9 = vector.load %arg4[%c0_9, %c0_10, %c0_11, %c0_12] : memref<1x3x128x128xbf16, #tpu.memory_space<vmem>>, vector<1x1x128x128xbf16>
    %10 = vector.shape_cast %9 : vector<1x1x128x128xbf16> to vector<128x128xbf16>
    %cst_13 = arith.constant dense<0.000000e+00> : vector<16x128xf32>
    %11 = tpu.matmul %8, %10, %cst_13 {dimension_numbers = #tpu.dot_dimension_numbers<[1], [0], [0], [1], [0, 0, 1, 1], [], []>} : vector<16x128xbf16>, vector<128x128xbf16>, vector<16x128xf32> -> vector<16x128xf32>
    %12 = arith.addf %6, %11 : vector<16x128xf32>
    %c1_14 = arith.constant 1 : index
    %c0_15 = arith.constant 0 : index
    %13 = vector.load %arg15[%c1_14, %c0_15] : memref<18x128xf32, #tpu.memory_space<vmem>>, vector<16x128xf32>
    %14 = arith.truncf %13 : vector<16x128xf32> to vector<16x128xbf16>
    %c0_16 = arith.constant 0 : index
    %c1_17 = arith.constant 1 : index
    %c0_18 = arith.constant 0 : index
    %c0_19 = arith.constant 0 : index
    %15 = vector.load %arg4[%c0_16, %c1_17, %c0_18, %c0_19] : memref<1x3x128x128xbf16, #tpu.memory_space<vmem>>, vector<1x1x128x128xbf16>
    %16 = vector.shape_cast %15 : vector<1x1x128x128xbf16> to vector<128x128xbf16>
    %cst_20 = arith.constant dense<0.000000e+00> : vector<16x128xf32>
    %17 = tpu.matmul %14, %16, %cst_20 {dimension_numbers = #tpu.dot_dimension_numbers<[1], [0], [0], [1], [0, 0, 1, 1], [], []>} : vector<16x128xbf16>, vector<128x128xbf16>, vector<16x128xf32> -> vector<16x128xf32>
    %18 = arith.addf %12, %17 : vector<16x128xf32>
    %c2 = arith.constant 2 : index
    %c0_21 = arith.constant 0 : index
    %19 = vector.load %arg15[%c2, %c0_21] : memref<18x128xf32, #tpu.memory_space<vmem>>, vector<16x128xf32>
    %20 = arith.truncf %19 : vector<16x128xf32> to vector<16x128xbf16>
    %c0_22 = arith.constant 0 : index
    %c2_23 = arith.constant 2 : index
    %c0_24 = arith.constant 0 : index
    %c0_25 = arith.constant 0 : index
    %21 = vector.load %arg4[%c0_22, %c2_23, %c0_24, %c0_25] : memref<1x3x128x128xbf16, #tpu.memory_space<vmem>>, vector<1x1x128x128xbf16>
    %22 = vector.shape_cast %21 : vector<1x1x128x128xbf16> to vector<128x128xbf16>
    %cst_26 = arith.constant dense<0.000000e+00> : vector<16x128xf32>
    %23 = tpu.matmul %20, %22, %cst_26 {dimension_numbers = #tpu.dot_dimension_numbers<[1], [0], [0], [1], [0, 0, 1, 1], [], []>} : vector<16x128xbf16>, vector<128x128xbf16>, vector<16x128xf32> -> vector<16x128xf32>
    %24 = arith.addf %18, %23 : vector<16x128xf32>
    %c0_27 = arith.constant 0 : index
    %c0_28 = arith.constant 0 : index
    %c0_29 = arith.constant 0 : index
    %25 = vector.load %arg5[%c0_27, %c0_28, %c0_29] : memref<1x1x128xf32, #tpu.memory_space<vmem>>, vector<1x1x128xf32>
    %26 = vector.shape_cast %25 : vector<1x1x128xf32> to vector<1x128xf32>
    %27 = vector.broadcast %26 : vector<1x128xf32> to vector<16x128xf32>
    %28 = arith.addf %24, %27 : vector<16x128xf32>
    %cst_30 = arith.constant 0.000000e+00 : f32
    %29 = vector.broadcast %cst_30 : f32 to vector<16x128xf32>
    %30 = arith.maximumf %28, %29 : vector<16x128xf32>
    %cst_31 = arith.constant dense<0.000000e+00> : vector<16xf32>
    %31 = vector.multi_reduction <add>, %30, %cst_31 [1] : vector<16x128xf32> to vector<16xf32>
    %32 = vector.shape_cast %31 : vector<16xf32> to vector<16x1xf32>
    %cst_32 = arith.constant 1.280000e+02 : f32
    %33 = vector.broadcast %cst_32 : f32 to vector<16x1xf32>
    %34 = arith.divf %32, %33 : vector<16x1xf32>
    %35 = arith.mulf %30, %30 : vector<16x128xf32>
    %cst_33 = arith.constant dense<0.000000e+00> : vector<16xf32>
    %36 = vector.multi_reduction <add>, %35, %cst_33 [1] : vector<16x128xf32> to vector<16xf32>
    %37 = vector.shape_cast %36 : vector<16xf32> to vector<16x1xf32>
    %cst_34 = arith.constant 1.280000e+02 : f32
    %38 = vector.broadcast %cst_34 : f32 to vector<16x1xf32>
    %39 = arith.divf %37, %38 : vector<16x1xf32>
    %40 = arith.mulf %34, %34 : vector<16x1xf32>
    %41 = arith.subf %39, %40 : vector<16x1xf32>
    %cst_35 = arith.constant 0.000000e+00 : f32
    %42 = vector.broadcast %cst_35 : f32 to vector<16x1xf32>
    %43 = arith.maximumf %41, %42 : vector<16x1xf32>
    %44 = vector.broadcast %34 : vector<16x1xf32> to vector<16x128xf32>
    %45 = arith.subf %30, %44 : vector<16x128xf32>
    %cst_36 = arith.constant 9.99999974E-6 : f32
    %46 = vector.broadcast %cst_36 : f32 to vector<16x1xf32>
    %47 = arith.addf %43, %46 : vector<16x1xf32>
    %48 = math.rsqrt %47 : vector<16x1xf32>
    %49 = vector.broadcast %48 : vector<16x1xf32> to vector<16x128xf32>
    %50 = arith.mulf %45, %49 : vector<16x128xf32>
    %c0_37 = arith.constant 0 : index
    %c0_38 = arith.constant 0 : index
    %c0_39 = arith.constant 0 : index
    %51 = vector.load %arg6[%c0_37, %c0_38, %c0_39] : memref<1x1x128xf32, #tpu.memory_space<vmem>>, vector<1x1x128xf32>
    %52 = vector.shape_cast %51 : vector<1x1x128xf32> to vector<1x128xf32>
    %53 = vector.broadcast %52 : vector<1x128xf32> to vector<16x128xf32>
    %54 = arith.mulf %50, %53 : vector<16x128xf32>
    %c0_40 = arith.constant 0 : index
    %c0_41 = arith.constant 0 : index
    %c0_42 = arith.constant 0 : index
    %55 = vector.load %arg7[%c0_40, %c0_41, %c0_42] : memref<1x1x128xf32, #tpu.memory_space<vmem>>, vector<1x1x128xf32>
    %56 = vector.shape_cast %55 : vector<1x1x128xf32> to vector<1x128xf32>
    %57 = vector.broadcast %56 : vector<1x128xf32> to vector<16x128xf32>
    %58 = arith.addf %54, %57 : vector<16x128xf32>
    %c1_43 = arith.constant 1 : index
    %c0_44 = arith.constant 0 : index
    %59 = vector.load %arg15[%c1_43, %c0_44] : memref<18x128xf32, #tpu.memory_space<vmem>>, vector<16x128xf32>
    tpu.vector_store %arg15[%c1_43, %c0_44], %58 {strides = array<i32>} : memref<18x128xf32, #tpu.memory_space<vmem>>, vector<16x128xf32>,
    %cst_45 = arith.constant 0.000000e+00 : f32
    %60 = vector.broadcast %cst_45 : f32 to vector<16x128xf32>
    %c0_46 = arith.constant 0 : index
    %c0_47 = arith.constant 0 : index
    %61 = vector.load %arg15[%c0_46, %c0_47] : memref<18x128xf32, #tpu.memory_space<vmem>>, vector<16x128xf32>
    %62 = arith.truncf %61 : vector<16x128xf32> to vector<16x128xbf16>
    %c0_48 = arith.constant 0 : index
    %c0_49 = arith.constant 0 : index
    %c0_50 = arith.constant 0 : index
    %c0_51 = arith.constant 0 : index
    %63 = vector.load %arg8[%c0_48, %c0_49, %c0_50, %c0_51] : memref<1x3x128x128xbf16, #tpu.memory_space<vmem>>, vector<1x1x128x128xbf16>
    %64 = vector.shape_cast %63 : vector<1x1x128x128xbf16> to vector<128x128xbf16>
    %cst_52 = arith.constant dense<0.000000e+00> : vector<16x128xf32>
    %65 = tpu.matmul %62, %64, %cst_52 {dimension_numbers = #tpu.dot_dimension_numbers<[1], [0], [0], [1], [0, 0, 1, 1], [], []>} : vector<16x128xbf16>, vector<128x128xbf16>, vector<16x128xf32> -> vector<16x128xf32>
    %66 = arith.addf %60, %65 : vector<16x128xf32>
    %c1_53 = arith.constant 1 : index
    %c0_54 = arith.constant 0 : index
    %67 = vector.load %arg15[%c1_53, %c0_54] : memref<18x128xf32, #tpu.memory_space<vmem>>, vector<16x128xf32>
    %68 = arith.truncf %67 : vector<16x128xf32> to vector<16x128xbf16>
    %c0_55 = arith.constant 0 : index
    %c1_56 = arith.constant 1 : index
    %c0_57 = arith.constant 0 : index
    %c0_58 = arith.constant 0 : index
    %69 = vector.load %arg8[%c0_55, %c1_56, %c0_57, %c0_58] : memref<1x3x128x128xbf16, #tpu.memory_space<vmem>>, vector<1x1x128x128xbf16>
    %70 = vector.shape_cast %69 : vector<1x1x128x128xbf16> to vector<128x128xbf16>
    %cst_59 = arith.constant dense<0.000000e+00> : vector<16x128xf32>
    %71 = tpu.matmul %68, %70, %cst_59 {dimension_numbers = #tpu.dot_dimension_numbers<[1], [0], [0], [1], [0, 0, 1, 1], [], []>} : vector<16x128xbf16>, vector<128x128xbf16>, vector<16x128xf32> -> vector<16x128xf32>
    %72 = arith.addf %66, %71 : vector<16x128xf32>
    %c2_60 = arith.constant 2 : index
    %c0_61 = arith.constant 0 : index
    %73 = vector.load %arg15[%c2_60, %c0_61] : memref<18x128xf32, #tpu.memory_space<vmem>>, vector<16x128xf32>
    %74 = arith.truncf %73 : vector<16x128xf32> to vector<16x128xbf16>
    %c0_62 = arith.constant 0 : index
    %c2_63 = arith.constant 2 : index
    %c0_64 = arith.constant 0 : index
    %c0_65 = arith.constant 0 : index
    %75 = vector.load %arg8[%c0_62, %c2_63, %c0_64, %c0_65] : memref<1x3x128x128xbf16, #tpu.memory_space<vmem>>, vector<1x1x128x128xbf16>
    %76 = vector.shape_cast %75 : vector<1x1x128x128xbf16> to vector<128x128xbf16>
    %cst_66 = arith.constant dense<0.000000e+00> : vector<16x128xf32>
    %77 = tpu.matmul %74, %76, %cst_66 {dimension_numbers = #tpu.dot_dimension_numbers<[1], [0], [0], [1], [0, 0, 1, 1], [], []>} : vector<16x128xbf16>, vector<128x128xbf16>, vector<16x128xf32> -> vector<16x128xf32>
    %78 = arith.addf %72, %77 : vector<16x128xf32>
    %c0_67 = arith.constant 0 : index
    %c0_68 = arith.constant 0 : index
    %c0_69 = arith.constant 0 : index
    %79 = vector.load %arg9[%c0_67, %c0_68, %c0_69] : memref<1x1x128xf32, #tpu.memory_space<vmem>>, vector<1x1x128xf32>
    %80 = vector.shape_cast %79 : vector<1x1x128xf32> to vector<1x128xf32>
    %81 = vector.broadcast %80 : vector<1x128xf32> to vector<16x128xf32>
    %82 = arith.addf %78, %81 : vector<16x128xf32>
    %cst_70 = arith.constant 0.000000e+00 : f32
    %83 = vector.broadcast %cst_70 : f32 to vector<16x128xf32>
    %84 = arith.maximumf %82, %83 : vector<16x128xf32>
    %cst_71 = arith.constant dense<0.000000e+00> : vector<16xf32>
    %85 = vector.multi_reduction <add>, %84, %cst_71 [1] : vector<16x128xf32> to vector<16xf32>
    %86 = vector.shape_cast %85 : vector<16xf32> to vector<16x1xf32>
    %cst_72 = arith.constant 1.280000e+02 : f32
    %87 = vector.broadcast %cst_72 : f32 to vector<16x1xf32>
    %88 = arith.divf %86, %87 : vector<16x1xf32>
    %89 = arith.mulf %84, %84 : vector<16x128xf32>
    %cst_73 = arith.constant dense<0.000000e+00> : vector<16xf32>
    %90 = vector.multi_reduction <add>, %89, %cst_73 [1] : vector<16x128xf32> to vector<16xf32>
    %91 = vector.shape_cast %90 : vector<16xf32> to vector<16x1xf32>
    %cst_74 = arith.constant 1.280000e+02 : f32
    %92 = vector.broadcast %cst_74 : f32 to vector<16x1xf32>
    %93 = arith.divf %91, %92 : vector<16x1xf32>
    %94 = arith.mulf %88, %88 : vector<16x1xf32>
    %95 = arith.subf %93, %94 : vector<16x1xf32>
    %cst_75 = arith.constant 0.000000e+00 : f32
    %96 = vector.broadcast %cst_75 : f32 to vector<16x1xf32>
    %97 = arith.maximumf %95, %96 : vector<16x1xf32>
    %98 = vector.broadcast %88 : vector<16x1xf32> to vector<16x128xf32>
    %99 = arith.subf %84, %98 : vector<16x128xf32>
    %cst_76 = arith.constant 9.99999974E-6 : f32
    %100 = vector.broadcast %cst_76 : f32 to vector<16x1xf32>
    %101 = arith.addf %97, %100 : vector<16x1xf32>
    %102 = math.rsqrt %101 : vector<16x1xf32>
    %103 = vector.broadcast %102 : vector<16x1xf32> to vector<16x128xf32>
    %104 = arith.mulf %99, %103 : vector<16x128xf32>
    %c0_77 = arith.constant 0 : index
    %c0_78 = arith.constant 0 : index
    %c0_79 = arith.constant 0 : index
    %105 = vector.load %arg10[%c0_77, %c0_78, %c0_79] : memref<1x1x128xf32, #tpu.memory_space<vmem>>, vector<1x1x128xf32>
    %106 = vector.shape_cast %105 : vector<1x1x128xf32> to vector<1x128xf32>
    %107 = vector.broadcast %106 : vector<1x128xf32> to vector<16x128xf32>
    %108 = arith.mulf %104, %107 : vector<16x128xf32>
    %c0_80 = arith.constant 0 : index
    %c0_81 = arith.constant 0 : index
    %c0_82 = arith.constant 0 : index
    %109 = vector.load %arg11[%c0_80, %c0_81, %c0_82] : memref<1x1x128xf32, #tpu.memory_space<vmem>>, vector<1x1x128xf32>
    %110 = vector.shape_cast %109 : vector<1x1x128xf32> to vector<1x128xf32>
    %111 = vector.broadcast %110 : vector<1x128xf32> to vector<16x128xf32>
    %112 = arith.addf %108, %111 : vector<16x128xf32>
    %c0_83 = arith.constant 0 : index
    %c0_84 = arith.constant 0 : index
    %c0_85 = arith.constant 0 : index
    %113 = vector.load %arg12[%c0_83, %c0_84, %c0_85] : memref<1x8x128xbf16, #tpu.memory_space<vmem>>, vector<1x8x128xbf16>
    %114 = vector.shape_cast %113 : vector<1x8x128xbf16> to vector<8x128xbf16>
    %115 = arith.truncf %112 : vector<16x128xf32> to vector<16x128xbf16>
    %cst_86 = arith.constant dense<0.000000e+00> : vector<8x16xf32>
    %116 = tpu.matmul %114, %115, %cst_86 {dimension_numbers = #tpu.dot_dimension_numbers<[1], [1], [0], [0], [0, 0, 1, 0], [], []>} : vector<8x128xbf16>, vector<16x128xbf16>, vector<8x16xf32> -> vector<8x16xf32>
    %117 = vector.extract_strided_slice %116 {offsets = [0, 0], sizes = [1, 16], strides = [1, 1]} : vector<8x16xf32> to vector<1x16xf32>
    %c0_87 = arith.constant 0 : index
    %c0_88 = arith.constant 0 : index
    %c0_89 = arith.constant 0 : index
    %118 = vector.load %arg13[%c0_87, %c0_88, %c0_89] : memref<1x1x1xf32, #tpu.memory_space<vmem>>, vector<1x1x1xf32>
    %119 = vector.shape_cast %118 : vector<1x1x1xf32> to vector<1x1xf32>
    %120 = vector.broadcast %119 : vector<1x1xf32> to vector<1x16xf32>
    %121 = arith.addf %117, %120 : vector<1x16xf32>
    %c0_90 = arith.constant 0 : index
    %c0_91 = arith.constant 0 : index
    %c0_92 = arith.constant 0 : index
    %122 = vector.load %arg3[%c0_90, %c0_91, %c0_92] : memref<1x1x16xf32, #tpu.memory_space<vmem>>, vector<1x1x16xf32>
    %123 = vector.shape_cast %122 : vector<1x1x16xf32> to vector<1x16xf32>
    %124 = arith.mulf %121, %123 : vector<1x16xf32>
    %c0_93 = arith.constant 0 : index
    %125 = arith.index_cast %arg1 : i32 to index
    %c0_94 = arith.constant 0 : index
    %126 = vector.load %arg14[%c0_93, %125, %c0_94] : memref<1x1x16xf32, #tpu.memory_space<vmem>>, vector<1x1x16xf32>
    %127 = vector.shape_cast %126 : vector<1x1x16xf32> to vector<1x16xf32>
    %128 = vector.shape_cast %124 : vector<1x16xf32> to vector<1x1x16xf32>
    tpu.vector_store %arg14[%c0_93, %125, %c0_94], %128 {strides = array<i32>} : memref<1x1x16xf32, #tpu.memory_space<vmem>>, vector<1x1x16xf32>,
    return
  }
  func.func @transform_0(%arg0: i32, %arg1: i32) -> (i32, i32, i32) {
    %c0_i32 = arith.constant 0 : i32
    %c0_i32_0 = arith.constant 0 : i32
    %c0_i32_1 = arith.constant 0 : i32
    return %arg0, %c0_i32, %c0_i32_0 : i32, i32, i32
  }
  func.func @transform_1(%arg0: i32, %arg1: i32) -> (i32, i32, i32) {
    %c0_i32 = arith.constant 0 : i32
    %c0_i32_0 = arith.constant 0 : i32
    %c0_i32_1 = arith.constant 0 : i32
    return %arg0, %c0_i32, %c0_i32_0 : i32, i32, i32
  }
  func.func @transform_2(%arg0: i32, %arg1: i32) -> (i32, i32, i32, i32) {
    %c0_i32 = arith.constant 0 : i32
    %c0_i32_0 = arith.constant 0 : i32
    %c0_i32_1 = arith.constant 0 : i32
    %c0_i32_2 = arith.constant 0 : i32
    return %arg1, %c0_i32, %c0_i32_0, %c0_i32_1 : i32, i32, i32, i32
  }
  func.func @transform_3(%arg0: i32, %arg1: i32) -> (i32, i32, i32) {
    %c0_i32 = arith.constant 0 : i32
    %c0_i32_0 = arith.constant 0 : i32
    %c0_i32_1 = arith.constant 0 : i32
    return %arg1, %c0_i32, %c0_i32_0 : i32, i32, i32
  }
  func.func @transform_4(%arg0: i32, %arg1: i32) -> (i32, i32, i32) {
    %c0_i32 = arith.constant 0 : i32
    %c0_i32_0 = arith.constant 0 : i32
    %c0_i32_1 = arith.constant 0 : i32
    return %arg1, %c0_i32, %c0_i32_0 : i32, i32, i32
  }
  func.func @transform_5(%arg0: i32, %arg1: i32) -> (i32, i32, i32) {
    %c0_i32 = arith.constant 0 : i32
    %c0_i32_0 = arith.constant 0 : i32
    %c0_i32_1 = arith.constant 0 : i32
    return %arg1, %c0_i32, %c0_i32_0 : i32, i32, i32
  }
  func.func @transform_6(%arg0: i32, %arg1: i32) -> (i32, i32, i32, i32) {
    %c0_i32 = arith.constant 0 : i32
    %c0_i32_0 = arith.constant 0 : i32
    %c0_i32_1 = arith.constant 0 : i32
    %c0_i32_2 = arith.constant 0 : i32
    return %arg1, %c0_i32, %c0_i32_0, %c0_i32_1 : i32, i32, i32, i32
  }
  func.func @transform_7(%arg0: i32, %arg1: i32) -> (i32, i32, i32) {
    %c0_i32 = arith.constant 0 : i32
    %c0_i32_0 = arith.constant 0 : i32
    %c0_i32_1 = arith.constant 0 : i32
    return %arg1, %c0_i32, %c0_i32_0 : i32, i32, i32
  }
  func.func @transform_8(%arg0: i32, %arg1: i32) -> (i32, i32, i32) {
    %c0_i32 = arith.constant 0 : i32
    %c0_i32_0 = arith.constant 0 : i32
    %c0_i32_1 = arith.constant 0 : i32
    return %arg1, %c0_i32, %c0_i32_0 : i32, i32, i32
  }
  func.func @transform_9(%arg0: i32, %arg1: i32) -> (i32, i32, i32) {
    %c0_i32 = arith.constant 0 : i32
    %c0_i32_0 = arith.constant 0 : i32
    %c0_i32_1 = arith.constant 0 : i32
    return %arg1, %c0_i32, %c0_i32_0 : i32, i32, i32
  }
  func.func @transform_10(%arg0: i32, %arg1: i32) -> (i32, i32, i32) {
    %c0_i32 = arith.constant 0 : i32
    %c0_i32_0 = arith.constant 0 : i32
    %c0_i32_1 = arith.constant 0 : i32
    return %arg1, %c0_i32, %c0_i32_0 : i32, i32, i32
  }
  func.func @transform_11(%arg0: i32, %arg1: i32) -> (i32, i32, i32) {
    %c0_i32 = arith.constant 0 : i32
    %c0_i32_0 = arith.constant 0 : i32
    %c0_i32_1 = arith.constant 0 : i32
    return %arg1, %c0_i32, %c0_i32_0 : i32, i32, i32
  }
  func.func @transform_12(%arg0: i32, %arg1: i32) -> (i32, i32, i32) {
    %c0_i32 = arith.constant 0 : i32
    %c0_i32_0 = arith.constant 0 : i32
    %c0_i32_1 = arith.constant 0 : i32
    return %arg0, %c0_i32, %c0_i32_0 : i32, i32, i32
  }
}

</mosaic_0001>

<bundles_post_ra>
// kernel: tpu_custom_call.1
= control target key start
LH: loop header
LB: loop body
LE: loop exit
PB: predicated region body
PF: predicated region fallthrough
CT: control target
= control target key end

     0   :  { %s2458_s0 = inlined_call_operand.hbm [shape: f32[2,16,128], index: 0, kind: input, shape index: {}]   ;;  %s2459_s1 = inlined_call_operand.vmem [shape: f32[2,1,16], index: 1, kind: input, shape index: {}]   ;;  %s2460_s2 = inlined_call_operand.hbm [shape: bf16[1,3,128,128], index: 2, kind: input, shape index: {}]   ;;  %s2461_s3 = inlined_call_operand.vmem [shape: f32[1,1,128], index: 3, kind: input, shape index: {}]   ;;  %s2462_s4 = inlined_call_operand.hbm [shape: f32[1,1,128], index: 4, kind: input, shape index: {}]   ;;  %s2463_s5 = inlined_call_operand.hbm [shape: f32[1,1,128], index: 5, kind: input, shape index: {}]   ;;  %s2464_s6 = inlined_call_operand.hbm [shape: bf16[1,3,128,128], index: 6, kind: input, shape index: {}]   ;;  %s2465_s7 = inlined_call_operand.vmem [shape: f32[1,1,128], index: 7, kind: input, shape index: {}]   ;;  %s2466_s8 = inlined_call_operand.vmem [shape: f32[1,1,128], index: 8, kind: input, shape index: {}]   ;;  %s2467_s9 = inlined_call_operand.vmem [shape: f32[1,1,128], index: 9, kind: input, shape index: {}]   ;;  %s2468_s10 = inlined_call_operand.vmem [shape: bf16[1,8,128], index: 10, kind: input, shape index: {}]   ;;  %s2469_s11 = inlined_call_operand.<no memory space> [shape: f32[1,1,1], index: 11, kind: input, shape index: {}]   ;;  %s2470_s12 = inlined_call_operand.hbm [shape: f32[2,1,16], index: 12, kind: output, shape index: {}]  }
   0x1   :  { %2475 = sst [smem:[#allocation21_spill]] %s2459_s1  ;;  %v17_v0 = vstv %s2469_s11 }
   0x2   :  { %2476 = sst [smem:[#allocation22_spill]] %s2460_s2  ;;  %18 = vst [vmem:[#allocation3] sm:$0x1] %v17_v0 }
   0x3   :  { %2477 = sst [smem:[#allocation23_spill]] %s2462_s4 }
   0x4   :  { %2478 = sst [smem:[#allocation24_spill]] %s2463_s5 }
   0x5   :  { %2479 = sst [smem:[#allocation25_spill]] %s2464_s6 }
   0x6   :  { %2480 = sst [smem:[#allocation26_spill]] %s2470_s12 }
   0x7   :  { %19 = vsyncpa [#allocation5], 0 }
   0x8   :  { %21 = vsyncpa [#allocation5 + $0x1], 0 }
   0x9   :  { %22 = vsyncpa [#allocation8], 0 }
   0xa   :  { %23 = vsyncpa [#allocation11], 0 }
   0xb   :  { %24 = vsyncpa [#allocation6], 0 }
   0xc   :  { %26 = vsyncpa [#allocation6 + $0x1], 0  ;;  %s2239_s23 = smov 0   ;;  %s2241_s24 = smov 0  }
   0xd   :  { %s2243_s25 = smov 0   ;;  %s2245_s26 = smov 0  }
   0xe   :  { %s2247_s27 = smov 0   ;;  %s2249_s28 = smov 0  }
   0xf LB: > { %2481 = sst [smem:[#allocation18_spill]] %s2138_s23  ;;  %s1524_s11 = sadd.s32 4294967295, %s2158_s28   ;;  %s2158_s28 = sphi %s2249_s28, %s32_s28   ;;  %s2154_s27 = sphi %s2247_s27, %s2505_s27   ;;  %s2150_s26 = sphi %s2245_s26, %s2504_s26   ;;  %s2146_s25 = sphi %s2243_s25, %s2503_s25   ;;  %s2142_s24 = sphi %s2241_s24, %s2502_s24   ;;  %s2138_s23 = sphi %s2239_s23, %s2501_s23  }
  0x10   : > { %s1525_s29 = sadd.s32 4294967294, %s2158_s28   ;;  %p64_p0 = scmp.ne.s32.totalorder %s2142_s24, %s2138_s23 }
  0x11   : > { %p2273_p1 = scmp.eq.s32.totalorder %s1524_s11, 0  ;;  %p2277_p2 = scmp.eq.s32.totalorder %s1524_s11, 1 }
  0x12   : > { %p380_p3 = scmp.eq.s32.totalorder %s1525_s29, 1  ;;  %p1526_p5 = scmp.ge.s32.totalorder %s2158_s28, 1 }
  0x13   : > { %p2283_p4 = por %p2273_p1, %p64_p0  ;;  %p387_p7 = scmp.lt.s32.totalorder %s2158_s28, 3 }
  0x14   : > { %p2288_p6 = por %p380_p3, %p64_p0  ;;  %s2487_s2 = sld [smem:[#allocation22_spill]] }
  0x15   : > { %p2296_p8 = pnand %p1526_p5, %p387_p7  ;;  %s2160_s20 = smov [#allocation7]  }
  0x16   : > { %s2485_s15 = scalar_select %p2288_p6, 1, 0 }
  0x17   : > { %p1810_p9 = pneg %p2296_p8  ;;  %s403_s21 = sshll.u32 %s2160_s20, 4  ;;  %s404_s21 = int_to_ptr.vmem [resolvable:$true] %s403_s21 }
  0x18   : > { %2486 = sst [smem:[#allocation19_spill]] %s2485_s15  ;;  %p1537_p11 = scmp.ge.s32.totalorder %s2158_s28, 2 }
  0x19   : > { %p2304_p10 = pnand %p1810_p9, %p2273_p1  ;;  %s2490_s5 = sld [smem:[#allocation24_spill]] }
  0x1a   : > { %s401_s18 = sshll.u32 %s2487_s2, 4  ;;  %s2161_s17 = smov 64   ;;  %s402_s18 = int_to_ptr.hbm [resolvable:$true] %s401_s18 }
  0x1b   : > { %s2162_s2 = smov 4   ;;  %s2163_s20 = smov [#allocation10]  }
  0x1c   : > { %1813 = dma.hbm_to_vmem [thread:$0]  (!%p2304_p10), %s402_s18, 3072, %s404_s21, [#allocation8], %s2161_s17, %s2161_s17, %s2162_s2  }
  0x1d   : > { %s438_s15 = sshll.u32 %s2163_s20, 4  ;;  %s2491_s4 = sld [smem:[#allocation23_spill]]  ;;  %s439_s15 = int_to_ptr.vmem [resolvable:$true] %s438_s15 }
  0x1e   : > { %s2492_s6 = sld [smem:[#allocation25_spill]]  ;;  %s2164_s21 = smov [#allocation9]  }
  0x1f   : > { %s436_s16 = sshll.u32 %s2490_s5, 4  ;;  %s425_s5 = sshll.u32 %s2164_s21, 4  ;;  %s437_s16 = int_to_ptr.hbm [resolvable:$true] %s436_s16  ;;  %s426_s5 = int_to_ptr.vmem [resolvable:$true] %s425_s5 }
  0x20   : > { %1819 = dma.hbm_to_vmem [thread:$0]  (!%p2304_p10), %s437_s16, 16, %s439_s15, [#allocation11]  }
  0x21   : > { %s2165_s12 = smov [#allocation12]   ;;  %s44_s15 = sadd.s32 1, %s2154_s27 }
  0x22   : > { %s452_s23 = sshll.u32 %s2165_s12, 4  ;;  %s51_s16 = sadd.s32 1, %s2146_s25  ;;  %s453_s23 = int_to_ptr.vmem [resolvable:$true] %s452_s23 }
  0x23   : > { %s423_s1 = sshll.u32 %s2491_s4, 4  ;;  %p46_p12 = scmp.ge.s32.totalorder %s44_s15, 2  ;;  %s424_s1 = int_to_ptr.hbm [resolvable:$true] %s423_s1 }
  0x24   : > { %s450_s18 = sshll.u32 %s2492_s6, 4  ;;  %p58_p13 = scmp.ne.s32.totalorder %s2146_s25, %s2142_s24  ;;  %s451_s18 = int_to_ptr.hbm [resolvable:$true] %s450_s18 }
  0x25   : > { %1816 = dma.hbm_to_vmem [thread:$0]  (!%p2304_p10), %s424_s1, 16, %s426_s5, [#allocation8]  }
  0x26   : > { %1822 = dma.hbm_to_vmem [thread:$0]  (!%p2304_p10), %s451_s18, 3072, %s453_s23, [#allocation11], %s2161_s17, %s2161_s17, %s2162_s2  }
  0x27   : > { %p59_p0 = scmp.eq.s32.totalorder %s2158_s28, 0  ;;  %p1835_p3 = scmp.lt.s32.totalorder %s2158_s28, 2 }
  0x28   : > { %s2507_s15 = smov (%p46_p12, %s44_s15), 0  ;;  %p2340_p7 = por %p2277_p2, %p58_p13 }
  0x29   : > { %2493 = sst [smem:[#allocation20_spill]] %s2507_s15  ;;  %p2334_p5 = por %p59_p0, %p58_p13 }
  0x2a   : > { %s48_s2 = ssub.s32 %s2154_s27, %s2507_s15  ;;  %s497_s5 = sand.u32 1, %s2146_s25  }
  0x2b   : > { %p49_p9 = scmp.eq.s32.totalorder %s48_s2, 0  ;;  %s1538_s22 = sshll.u32 %s497_s5, 4 }
  0x2c   : > { %s1741_s17 = sshll.u32 %s2154_s27, 4  ;;  %s501_s23 = scalar_lea.vmem [#allocation4], %s1538_s22 }
  0x2d   : > { %s2349_s11 = scalar_select %p49_p9, %s2146_s25, %s51_s16  }
  0x2e   : > { %s506_s21 = scalar_lea.hbm %s2458_s0, %s1741_s17  ;;  %s509_s4 = sshll.u32 %s501_s23, 4  ;;  %s510_s4 = int_to_ptr.vmem [resolvable:$true] %s509_s4 }
  0x2f   : > { %s507_s12 = sshll.u32 %s506_s21, 4  ;;  %p1824_p2 = pnand %p1835_p3, %p2334_p5  ;;  %s508_s12 = int_to_ptr.hbm [resolvable:$true] %s507_s12 }
  0x30   : > { %s498_s13 = scalar_lea.sflag [#allocation5], %s497_s5  ;;  %s2166_s6 = smov 128  }
  0x31   : > { %s2167_s15 = smov 8   ;;  %527 = sbr.rel (%p2296_p8) target bundleno = 840 (0x348), region = 68 }
  0x32   : > { %1826 = dma.hbm_to_vmem [thread:$0]  (!%p1824_p2), %s508_s12, 256, %s510_s4, %s498_s13, %s2166_s6, %s2166_s6, %s2167_s15  }
  0x33   : > { %s2361_s16 = sand.u32 (!%p2296_p8), 1, %s2142_s24  }
  0x34   : > { %s1542_s2 = sshll.u32 (!%p2296_p8), %s2361_s16, 4  ;;  %s530_s22 = scalar_lea.sflag (!%p2296_p8), [#allocation5], %s2361_s16 }
  0x35   : > { %s533_s17 = scalar_lea.vmem (!%p2296_p8), [#allocation4], %s1542_s2 }
  0x36   : > { %2121 = dma.done.wait (%p2283_p4), %s530_s22, 256  }
  0x37   : > { %2123 = vsyncadd (%p2283_p4), %s530_s22, 4294967040 }
  0x38   : > { %2125 = dma.done.wait (%p2273_p1), [#allocation8], 3088  }
  0x39   : > { %2127 = vsyncadd (%p2273_p1), [#allocation8], 4294964208 }
  0x3a   : > { %2129 = dma.done.wait (%p2273_p1), [#allocation11], 3088  }
  0x3b   : > { %2131 = vsyncadd (%p2273_p1), [#allocation11], 4294964208  ;;  %v2168_v1 = vmov 0.0   ;;  %v1757_v2 = vld [vmem:[#allocation7 + $0x78] sm:$0xff]  ;;  %v1756_v5 = vld [vmem:[#allocation7 + $0x70] sm:$0xff]  ;;  %v2169_v52 = vmov 128.0  }
  0x3c   : > { %639 = vst [vmem:[#allocation2] sm:$0x1] %v2168_v1  ;;  %v1749_v3 = vld [vmem:[#allocation7 + $0x38] sm:$0xff]  ;;  %732 = vmatpush.bf16.msra.mxu0 %v1757_v2  ;;  %v1748_v6 = vld [vmem:[#allocation7 + $0x30] sm:$0xff]  ;;  %v1755_v8 = vld [vmem:[#allocation7 + $0x68] sm:$0xff]  ;;  %1908 = vrcp.f32 %v2169_v52  ;;  %p616_p1 = scmp.lt.s32.totalorder %s2150_s26, 1 }
  0x3d   : > { %640 = vst [vmem:[#allocation2 + $0x11] sm:$0x1] %v2168_v1  ;;  %v1765_v4 = vld [vmem:[#allocation7 + $0xb8] sm:$0xff]  ;;  %794 = vmatpush.bf16.msra.mxu1 %v1749_v3  ;;  %v1764_v7 = vld [vmem:[#allocation7 + $0xb0] sm:$0xff]  ;;  %v1747_v9 = vld [vmem:[#allocation7 + $0x28] sm:$0xff]  ;;  %s2496_s13 = sld [smem:[#allocation21_spill]] }
  0x3e   : > { %876 = vmatpush.bf16.msra.mxu2 %v1765_v4  ;;  %v1763_v10 = vld [vmem:[#allocation7 + $0xa8] sm:$0xff]  ;;  %v641_v11 = vld [vmem:[%s533_s17] sm:$0xff]  ;;  %v1753_v16 = vld [vmem:[#allocation7 + $0x58] sm:$0xff]  ;;  %s617_s21 = scalar_select %p616_p1, %s2150_s26, 1  ;;  %vm1306_vm13 = vcmask 122880  }
  0x3f   : > { %v642_v12 = vld [vmem:[%s533_s17 + $0x8] sm:$0xff]  ;;  %v1754_v13 = vld [vmem:[#allocation7 + $0x60] sm:$0xff]  ;;  %643 = vst [vmem:[#allocation2 + $0x1] sm:$0xff] %v641_v11  ;;  %v1752_v19 = vld [vmem:[#allocation7 + $0x50] sm:$0xff]  ;;  %s2497_s4 = sld [smem:[#allocation26_spill]]  ;;  %s615_s30 = scalar_lea.vmem [#allocation13], %s2361_s16 }
  0x40   : > { %733 = vmatpush.bf16.msra.mxu0 %v1756_v5  ;;  %v1746_v14 = vld [vmem:[#allocation7 + $0x20] sm:$0xff]  ;;  %644 = vst [vmem:[#allocation2 + $0x9] sm:$0xff] %v642_v12  ;;  %v1745_v17 = vld [vmem:[#allocation7 + $0x18] sm:$0xff]  ;;  %v1744_v20 = vld [vmem:[#allocation7 + $0x10] sm:$0xff]  ;;  %v666_v32 = vpack.c.bf16 %v642_v12, %v641_v11  ;;  %s1319_s14 = sshll.u32 %s615_s30, 4  ;;  %s1309_s15 = scalar_lea.sflag [#allocation6], %s2361_s16  ;;  %s1320_s14 = int_to_ptr.vmem [resolvable:$true] %s1319_s14 }
  0x41   : > { %795 = vmatpush.bf16.msra.mxu1 %v1748_v6  ;;  %v1762_v15 = vld [vmem:[#allocation7 + $0xa0] sm:$0xff]  ;;  %v1761_v18 = vld [vmem:[#allocation7 + $0x98] sm:$0xff]  ;;  %v1760_v21 = vld [vmem:[#allocation7 + $0x90] sm:$0xff] }
  0x42   : > { %877 = vmatpush.bf16.msra.mxu2 %v1764_v7  ;;  %v1751_v22 = vld [vmem:[#allocation7 + $0x48] sm:$0xff]  ;;  %v1750_v25 = vld [vmem:[#allocation7 + $0x40] sm:$0xff]  ;;  %v1909_v53 = vpop.eup %1908  ;;  %v1780_v56 = vld [vmem:[#allocation12 + $0x70] sm:$0xff] }
  0x43   : > { %v1743_v23 = vld [vmem:[#allocation7 + $0x8] sm:$0xff]  ;;  %v1742_v26 = vld [vmem:[#allocation7] sm:$0xff]  ;;  %v905_v55 = vmul.f32 128.0, %v1909_v53  ;;  %v1772_v62 = vld [vmem:[#allocation12 + $0x30] sm:$0xff]  ;;  %vm909_vm0 = vweird.f32 %v1909_v53  ;;  %s618_s2 = scalar_lea.vmem %s2496_s13, %s617_s21 }
  0x44   : > { %734 = vmatpush.bf16.msra.mxu0 %v1755_v8  ;;  %v1759_v24 = vld [vmem:[#allocation7 + $0x88] sm:$0xff]  ;;  %v1758_v29 = vld [vmem:[#allocation7 + $0x80] sm:$0xff]  ;;  %v1788_v63 = vld [vmem:[#allocation12 + $0xb0] sm:$0xff] }
  0x45   : > { %796 = vmatpush.bf16.msra.mxu1 %v1747_v9  ;;  %v1902_v38 = vld [vmem:[%s2461_s3] ss:$0 sm:$0xff]  ;;  %v1781_v54 = vld [vmem:[#allocation12 + $0x78] sm:$0xff]  ;;  %v906_v57 = vsub.f32 1.0, %v905_v55  ;;  %v1779_v60 = vld [vmem:[#allocation12 + $0x68] sm:$0xff]  ;;  %s1317_s6 = scalar_lea.hbm %s2497_s4, %s2150_s26  ;;  %s2088_s18 = scalar_lea.hbm %s2497_s4, 2 }
  0x46   : > { %878 = vmatpush.bf16.msra.mxu2 %v1763_v10  ;;  %v645_v27 = vld [vmem:[#allocation2] sm:$0xff]  ;;  %1054 = vmatpush.bf16.msra.mxu3 %v1781_v54  ;;  %v1773_v58 = vld [vmem:[#allocation12 + $0x38] sm:$0xff]  ;;  %v1776_v10 = vld [vmem:[#allocation12 + $0x50] sm:$0xff]  ;;  %s1321_s19 = sshll.u32 %s1317_s6, 4  ;;  %s1322_s19 = int_to_ptr.hbm [resolvable:$true] %s1321_s19 }
  0x47   : > { %v646_v28 = vld [vmem:[#allocation2 + $0x8] sm:$0xff]  ;;  %v1789_v59 = vld [vmem:[#allocation12 + $0xb8] sm:$0xff]  ;;  %v907_v61 = vmul.f32 %v1909_v53, %v906_v57  ;;  %v1778_v0 = vld [vmem:[#allocation12 + $0x60] sm:$0xff]  ;;  %s2082_s20 = sshra.s32 %s1322_s19, 4  ;;  %s2083_s20 = int_to_ptr.hbm [resolvable:$true] %s2082_s20 }
  0x48   : > { %735 = vmatpush.bf16.msra.mxu0 %v1754_v13  ;;  %v808_v30 = vld [vmem:[#allocation2 + $0x2] sm:$0xff]  ;;  %v809_v31 = vld [vmem:[#allocation2 + $0xa] sm:$0xff]  ;;  %v647_v33 = vpack.c.bf16 %v646_v28, %v645_v27  ;;  %v1777_v4 = vld [vmem:[#allocation12 + $0x58] sm:$0xff]  ;;  %s2084_s5 = scalar_lea.hbm %s2083_s20, 1  ;;  %p2089_p12 = scmp.lt.s32.totalorder %s2083_s20, %s2497_s4 }
  0x49   : > { %797 = vmatpush.bf16.msra.mxu1 %v1746_v14  ;;  %v810_v34 = vpack.c.bf16 %v809_v31, %v808_v30  ;;  %v908_v1 = vadd.f32 %v1909_v53, %v907_v61  ;;  %v1771_v2 = vld [vmem:[#allocation12 + $0x28] sm:$0xff]  ;;  %v1770_v8 = vld [vmem:[#allocation12 + $0x20] sm:$0xff]  ;;  %p2085_p4 = scmp.ne.s32.totalorder %s2083_s20, %s2084_s5  ;;  %p2090_p13 = scmp.lt.s32.totalorder %s2088_s18, %s2084_s5 }
  0x4a   : > { %879 = vmatpush.bf16.msra.mxu2 %v1762_v15  ;;  %1055 = vmatpush.bf16.msra.mxu3 %v1780_v56  ;;  %v1787_v3 = vld [vmem:[#allocation12 + $0xa8] sm:$0xff]  ;;  %v1786_v9 = vld [vmem:[#allocation12 + $0xa0] sm:$0xff]  ;;  %v1769_v15 = vld [vmem:[#allocation12 + $0x18] sm:$0xff] }
  0x4b   : > { %v2390_v5 = vsel %vm909_vm0, %v1909_v53, %v908_v1  ;;  %v1767_v28 = vld [vmem:[#allocation12 + $0x8] sm:$0xff]  ;;  %v1766_v31 = vld [vmem:[#allocation12] sm:$0xff]  ;;  %p2086_p8 = pnand %p2085_p4, %p2340_p7  ;;  %p2091_p0 = por %p2090_p13, %p2089_p12 }
  0x4c   : > { %736 = vmatpush.bf16.msra.mxu0 %v1753_v16  ;;  %v1785_v16 = vld [vmem:[#allocation12 + $0x98] sm:$0xff] }
  0x4d   : > { %798 = vmatpush.bf16.msra.mxu1 %v1745_v17  ;;  %v1775_v17 = vld [vmem:[#allocation12 + $0x48] sm:$0xff]  ;;  %p2087_p10 = pneg %p2086_p8 }
  0x4e   : > { %880 = vmatpush.bf16.msra.mxu2 %v1761_v18  ;;  %1056 = vmatpush.bf16.msra.mxu3 %v1779_v60 }
  0x4f   : > { %p2092_p3 = pnand %p2091_p0, %p2087_p10 }
  0x50   : > { %737 = vmatpush.bf16.msra.mxu0 %v1752_v19 }
  0x51   : > { %799 = vmatpush.bf16.msra.mxu1 %v1744_v20 }
  0x52   : > { %881 = vmatpush.bf16.msra.mxu2 %v1760_v21  ;;  %1057 = vmatpush.bf16.msra.mxu3 %v1778_v0 }
  0x54   : > { %738 = vmatpush.bf16.msra.mxu0 %v1751_v22  ;;  %v1768_v22 = vld [vmem:[#allocation12 + $0x10] sm:$0xff] }
  0x55   : > { %800 = vmatpush.bf16.msra.mxu1 %v1743_v23  ;;  %v1784_v23 = vld [vmem:[#allocation12 + $0x90] sm:$0xff] }
  0x56   : > { %882 = vmatpush.bf16.msra.mxu2 %v1759_v24  ;;  %1058 = vmatpush.bf16.msra.mxu3 %v1777_v4  ;;  %v1774_v24 = vld [vmem:[#allocation12 + $0x40] sm:$0xff] }
  0x58   : > { %739 = vmatpush.bf16.msra.mxu0 %v1750_v25 }
  0x59   : > { %801 = vmatpush.bf16.msra.mxu1 %v1742_v26 }
  0x5a   : > { %883 = vmatpush.bf16.msra.mxu2 %v1758_v29  ;;  %1059 = vmatpush.bf16.msra.mxu3 %v1776_v10  ;;  %v1783_v29 = vld [vmem:[#allocation12 + $0x88] sm:$0xff] }
  0x5b   : > { %740 = vmatmul.bf16.vlgmr.msra.gmra.mxu0 %v666_v32  ;;  %v1782_v32 = vld [vmem:[#allocation12 + $0x80] sm:$0xff] }
  0x5c   : > { %802 = vmatmul.bf16.vlgmr.msra.gmra.mxu1 %v647_v33  ;;  %1116 = vmatpush.bf16.msrb.mxu0 %v1773_v58 }
  0x5d   : > { %884 = vmatmul.bf16.vlgmr.msra.gmra.mxu2 %v810_v34  ;;  %1198 = vmatpush.bf16.msrb.mxu1 %v1789_v59 }
  0x5e   : > { %1060 = vmatpush.bf16.msra.mxu3 %v1775_v17 }
  0x60   : > { %1117 = vmatpush.bf16.msrb.mxu0 %v1772_v62 }
  0x61   : > { %1199 = vmatpush.bf16.msrb.mxu1 %v1788_v63 }
  0x62   : > { %1061 = vmatpush.bf16.msra.mxu3 %v1774_v24 }
  0x64   : > { %1118 = vmatpush.bf16.msrb.mxu0 %v1771_v2 }
  0x65   : > { %1200 = vmatpush.bf16.msrb.mxu1 %v1787_v3 }
  0x68   : > { %1119 = vmatpush.bf16.msrb.mxu0 %v1770_v8 }
  0x69   : > { %1201 = vmatpush.bf16.msrb.mxu1 %v1786_v9 }
  0x6c   : > { %1120 = vmatpush.bf16.msrb.mxu0 %v1769_v15 }
  0x6d   : > { %1202 = vmatpush.bf16.msrb.mxu1 %v1785_v16 }
  0x70   : > { %1121 = vmatpush.bf16.msrb.mxu0 %v1768_v22 }
  0x71   : > { %1203 = vmatpush.bf16.msrb.mxu1 %v1784_v23 }
  0x74   : > { %1122 = vmatpush.bf16.msrb.mxu0 %v1767_v28 }
  0x75   : > { %1204 = vmatpush.bf16.msrb.mxu1 %v1783_v29 }
  0x78   : > { %1123 = vmatpush.bf16.msrb.mxu0 %v1766_v31 }
  0x79   : > { %1205 = vmatpush.bf16.msrb.mxu1 %v1782_v32 }
  0xd8   : > { %v741_v35 = vpop.f32.mrf.mxu0 }
  0xd9   : > { %v803_v36 = vpop.f32.mrf.mxu1 }
  0xda   : > { %v804_v37 = vadd.f32 %v803_v36, %v741_v35 }
  0xe0   : > { %v885_v39 = vpop.f32.mrf.mxu2  ;;  %v743_v42 = vpop.f32.mrf.mxu0 }
  0xe1   : > { %v890_v40 = vadd.f32 %v885_v39, %v804_v37  ;;  %v805_v43 = vpop.f32.mrf.mxu1 }
  0xe2   : > { %v806_v45 = vadd.f32 %v805_v43, %v743_v42  ;;  %v1903_v43 = vld [vmem:[#allocation9] ss:$0 sm:$0xff] }
  0xe3   : > { %v896_v41 = vadd.f32 %v1902_v38, %v890_v40 }
  0xe5   : > { %v2380_v44 = vmax.f32 %v896_v41, 0.0 }
  0xe7   : > { %900 = vadd.xlane.f32.xlu0 %v2380_v44  ;;  %v913_v46 = vmul.f32 %v2380_v44, %v2380_v44 }
  0xe8   : > { %v887_v47 = vpop.f32.mrf.mxu2 }
  0xe9   : > { %v891_v48 = vadd.f32 %v887_v47, %v806_v45  ;;  %915 = vadd.xlane.f32.xlu1 %v913_v46  ;;  %v1904_v47 = vld [vmem:[#allocation10] ss:$0 sm:$0xff] }
  0xeb   : > { %v897_v49 = vadd.f32 %v1902_v38, %v891_v48 }
  0xed   : > { %v2385_v50 = vmax.f32 %v897_v49, 0.0 }
  0xef   : > { %902 = vadd.xlane.f32.xlu0 %v2385_v50  ;;  %v914_v51 = vmul.f32 %v2385_v50, %v2385_v50 }
  0xf1   : > { %917 = vadd.xlane.f32.xlu1 %v914_v51 }
 0x15a   : > { %v901_v6 = vpop.xlane.xlu0 %900 }
 0x15b   : > { %v911_v7 = vmul.f32 %v2390_v5, %v901_v6 }
 0x15c   : > { %v916_v11 = vpop.xlane.xlu1 %915 }
 0x15d   : > { %v921_v12 = vmul.f32 %v911_v7, %v911_v7  ;;  %v919_v13 = vmul.f32 %v916_v11, %v2390_v5  ;;  %v927_v42 = vsub.f32 %v2380_v44, %v911_v7  ;;  %v1905_v7 = vld [vmem:[%s2465_s7] ss:$0 sm:$0xff] }
 0x15f   : > { %v923_v14 = vsub.f32 %v919_v13, %v921_v12 }
 0x161   : > { %v925_v18 = vmax.f32 %v923_v14, 0.0 }
 0x162   : > { %v903_v19 = vpop.xlane.xlu0 %902 }
 0x163   : > { %v929_v20 = vadd.f32 1e-05, %v925_v18  ;;  %v912_v21 = vmul.f32 %v2390_v5, %v903_v19 }
 0x164   : > { %v918_v25 = vpop.xlane.xlu1 %917 }
 0x165   : > { %1910 = vrsqrt.f32 %v929_v20  ;;  %v922_v26 = vmul.f32 %v912_v21, %v912_v21  ;;  %v920_v27 = vmul.f32 %v918_v25, %v2390_v5  ;;  %vm937_vm2 = vweird.f32 %v929_v20 }
 0x166   : > { %v928_v56 = vsub.f32 %v2385_v50, %v912_v21 }
 0x167   : > { %v924_v30 = vsub.f32 %v920_v27, %v922_v26 }
 0x169   : > { %v926_v33 = vmax.f32 %v924_v30, 0.0 }
 0x16b   : > { %v1911_v34 = vpop.eup %1910  ;;  %v930_v36 = vadd.f32 1e-05, %v926_v33 }
 0x16c   : > { %v932_v35 = vmul.f32 %v1911_v34, %v929_v20  ;;  %vm938_vm1 = vweird.f32 %v1911_v34 }
 0x16d   : > { %1912 = vrsqrt.f32 %v930_v36  ;;  %vm939_vm3 = vmor %vm937_vm2, %vm938_vm1  ;;  %vm947_vm5 = vweird.f32 %v930_v36 }
 0x16e   : > { %v933_v37 = vmul.f32 %v1911_v34, %v932_v35 }
 0x170   : > { %v934_v38 = vmul.f32 0.5, %v933_v37 }
 0x172   : > { %v935_v39 = vsub.f32 1.5, %v934_v38 }
 0x173   : > { %v1913_v40 = vpop.eup %1912 }
 0x174   : > { %v936_v41 = vmul.f32 %v1911_v34, %v935_v39  ;;  %v942_v45 = vmul.f32 %v1913_v40, %v930_v36  ;;  %vm948_vm4 = vweird.f32 %v1913_v40  ;;  %v1295_v39 = vld [vmem:[#allocation3] sm:$0x1] }
 0x175   : > { %vm949_vm6 = vmor %vm947_vm5, %vm948_vm4 }
 0x176   : > { %v940_v46 = vsel %vm939_vm3, %v1911_v34, %v936_v41  ;;  %v943_v49 = vmul.f32 %v1913_v40, %v942_v45  ;;  %v2170_v41 = vmov 0  }
 0x177   : > { %v951_v48 = vmul.f32 %v940_v46, %v927_v42  ;;  %1900 = vset.pattern.permute.xlu2 %v2170_v41  ;;  %1901 = vset.pattern.permute.xlu0 %v2170_v41 }
 0x178   : > { %v944_v52 = vmul.f32 0.5, %v943_v49 }
 0x179   : > { %v957_v51 = vmul.f32 %v1903_v43, %v951_v48 }
 0x17a   : > { %v945_v54 = vsub.f32 1.5, %v944_v52 }
 0x17b   : > { %v963_v53 = vadd.f32 %v1904_v47, %v957_v51 }
 0x17c   : > { %v946_v55 = vmul.f32 %v1913_v40, %v945_v54 }
 0x17d   : > { %965 = vst [vmem:[#allocation2 + $0x1] sm:$0xff] %v963_v53 }
 0x17e   : > { %v950_v57 = vsel %vm949_vm6, %v1913_v40, %v946_v55 }
 0x17f   : > { %v952_v44 = vmul.f32 %v950_v57, %v928_v56 }
 0x181   : > { %v958_v58 = vmul.f32 %v1903_v43, %v952_v44 }
 0x183   : > { %v964_v59 = vadd.f32 %v1904_v47, %v958_v58  ;;  %v1907_v58 = vld [vmem:[%s2467_s9] ss:$0 sm:$0xff] }
 0x184   : > { %v967_v61 = vld [vmem:[#allocation2] sm:$0xff] }
 0x185   : > { %966 = vst [vmem:[#allocation2 + $0x9] sm:$0xff] %v964_v59  ;;  %v988_v60 = vpack.c.bf16 %v964_v59, %v963_v53  ;;  %v1906_v53 = vld [vmem:[%s2466_s8] ss:$0 sm:$0xff] }
 0x187   : > { %1062 = vmatmul.bf16.vlgmr.msra.gmra.mxu3 %v988_v60 }
 0x18c   : > { %v968_v62 = vld [vmem:[#allocation2 + $0x8] sm:$0xff] }
 0x18d   : > { %v1130_v63 = vld [vmem:[#allocation2 + $0x2] sm:$0xff]  ;;  %v1131_v0 = vld [vmem:[#allocation2 + $0xa] sm:$0xff]  ;;  %v969_v1 = vpack.c.bf16 %v968_v62, %v967_v61 }
 0x18e   : > { %v1132_v2 = vpack.c.bf16 %v1131_v0, %v1130_v63  ;;  %v1280_v63 = vld [vmem:[%s2468_s10] sm:$0xf] }
 0x18f   : > { %1124 = vmatmul.bf16.vlgmr.msrb.gmra.mxu0 %v969_v1 }
 0x190   : > { %1206 = vmatmul.bf16.vlgmr.msrb.gmra.mxu1 %v1132_v2 }
 0x20a   : > { %v1063_v3 = vpop.f32.mrf.mxu3 }
 0x20c   : > { %v1125_v4 = vpop.f32.mrf.mxu0 }
 0x20d   : > { %v1207_v6 = vpop.f32.mrf.mxu1  ;;  %v1126_v50 = vadd.f32 %v1125_v4, %v1063_v3  ;;  %v1303_v3 = vld [vmem:[%s618_s2] sm:$0x1] }
 0x20f   : > { %v1212_v8 = vadd.f32 %v1207_v6, %v1126_v50 }
 0x211   : > { %v1218_v9 = vadd.f32 %v1905_v7, %v1212_v8 }
 0x212   : > { %v1065_v12 = vpop.f32.mrf.mxu3 }
 0x213   : > { %v1220_v10 = vmax.f32 %v1218_v9, 0.0 }
 0x214   : > { %v1127_v11 = vpop.f32.mrf.mxu0 }
 0x215   : > { %v1128_v13 = vadd.f32 %v1127_v11, %v1065_v12  ;;  %1222 = vadd.xlane.f32.xlu2 %v1220_v10  ;;  %v1228_v14 = vmul.f32 %v1220_v10, %v1220_v10  ;;  %v1209_v15 = vpop.f32.mrf.mxu1 }
 0x217   : > { %v1213_v16 = vadd.f32 %v1209_v15, %v1128_v13  ;;  %1230 = vadd.xlane.f32.xlu0 %v1228_v14 }
 0x219   : > { %v1219_v17 = vadd.f32 %v1905_v7, %v1213_v16 }
 0x21b   : > { %v1221_v18 = vmax.f32 %v1219_v17, 0.0 }
 0x21d   : > { %1224 = vadd.xlane.f32.xlu2 %v1221_v18  ;;  %v1229_v19 = vmul.f32 %v1221_v18, %v1221_v18 }
 0x21f   : > { %1232 = vadd.xlane.f32.xlu1 %v1229_v19 }
 0x235   : > { %1298 = vperm.xlu2 %1900, %v1295_v39  }
 0x288   : > { %v1223_v20 = vpop.xlane.xlu2 %1222 }
 0x289   : > { %v1226_v21 = vmul.f32 %v1223_v20, %v2390_v5 }
 0x28a   : > { %v1231_v22 = vpop.xlane.xlu0 %1230 }
 0x28b   : > { %v1236_v23 = vmul.f32 %v1226_v21, %v1226_v21  ;;  %v1234_v24 = vmul.f32 %v1231_v22, %v2390_v5  ;;  %v1242_v49 = vsub.f32 %v1220_v10, %v1226_v21 }
 0x28d   : > { %v1238_v25 = vsub.f32 %v1234_v24, %v1236_v23 }
 0x28f   : > { %v1240_v26 = vmax.f32 %v1238_v25, 0.0 }
 0x290   : > { %v1225_v27 = vpop.xlane.xlu2 %1224 }
 0x291   : > { %v1244_v28 = vadd.f32 1e-05, %v1240_v26  ;;  %v1227_v29 = vmul.f32 %v1225_v27, %v2390_v5 }
 0x292   : > { %v1233_v30 = vpop.xlane.xlu1 %1232 }
 0x293   : > { %1914 = vrsqrt.f32 %v1244_v28  ;;  %v1237_v31 = vmul.f32 %v1227_v29, %v1227_v29  ;;  %v1235_v32 = vmul.f32 %v1233_v30, %v2390_v5  ;;  %vm1252_vm8 = vweird.f32 %v1244_v28 }
 0x294   : > { %v1243_v55 = vsub.f32 %v1221_v18, %v1227_v29 }
 0x295   : > { %v1239_v33 = vsub.f32 %v1235_v32, %v1237_v31 }
 0x297   : > { %v1241_v34 = vmax.f32 %v1239_v33, 0.0 }
 0x298   : > { %v1299_v0 = vpop.permute.xlu2 %1298 }
 0x299   : > { %v1915_v35 = vpop.eup %1914  ;;  %v1245_v37 = vadd.f32 1e-05, %v1241_v34  ;;  %v1301_v1 = vperm.slane %v1299_v0, 0 }
 0x29a   : > { %v1247_v36 = vmul.f32 %v1915_v35, %v1244_v28  ;;  %vm1253_vm7 = vweird.f32 %v1915_v35 }
 0x29b   : > { %1916 = vrsqrt.f32 %v1245_v37  ;;  %vm1254_vm9 = vmor %vm1252_vm8, %vm1253_vm7  ;;  %vm1262_vm11 = vweird.f32 %v1245_v37 }
 0x29c   : > { %v1248_v38 = vmul.f32 %v1915_v35, %v1247_v36 }
 0x29e   : > { %v1249_v40 = vmul.f32 0.5, %v1248_v38 }
 0x2a0   : > { %v1250_v42 = vsub.f32 1.5, %v1249_v40 }
 0x2a1   : > { %v1917_v43 = vpop.eup %1916 }
 0x2a2   : > { %v1257_v45 = vmul.f32 %v1917_v43, %v1245_v37  ;;  %v1251_v46 = vmul.f32 %v1915_v35, %v1250_v42  ;;  %vm1263_vm10 = vweird.f32 %v1917_v43 }
 0x2a3   : > { %vm1264_vm12 = vmor %vm1262_vm11, %vm1263_vm10 }
 0x2a4   : > { %v1258_v5 = vmul.f32 %v1917_v43, %v1257_v45  ;;  %v1255_v48 = vsel %vm1254_vm9, %v1915_v35, %v1251_v46 }
 0x2a5   : > { %v1266_v52 = vmul.f32 %v1255_v48, %v1242_v49 }
 0x2a6   : > { %v1259_v47 = vmul.f32 0.5, %v1258_v5 }
 0x2a7   : > { %v1272_v44 = vmul.f32 %v1906_v53, %v1266_v52 }
 0x2a8   : > { %v1260_v51 = vsub.f32 1.5, %v1259_v47 }
 0x2a9   : > { %v1278_v60 = vadd.f32 %v1907_v58, %v1272_v44 }
 0x2aa   : > { %v1261_v54 = vmul.f32 %v1917_v43, %v1260_v51 }
 0x2ac   : > { %v1265_v56 = vsel %vm1264_vm12, %v1917_v43, %v1261_v54 }
 0x2ad   : > { %v1267_v57 = vmul.f32 %v1265_v56, %v1243_v55 }
 0x2af   : > { %v1273_v59 = vmul.f32 %v1906_v53, %v1267_v57 }
 0x2b1   : > { %v1279_v61 = vadd.f32 %v1907_v58, %v1273_v59 }
 0x2b3   : > { %v1281_v62 = vpack.c.bf16 %v1279_v61, %v1278_v60 }
 0x2b5   : > { %1289 = vmatpush.bf16.xpose.msrb.mxu2 %v1281_v62 }
 0x2bc   : > { %1290 = vmatmul.bf16.vlgmr.msrb.gmra.mxu2 %v1280_v63 }
 0x33f   : > { %v1291_v2 = vpop.f32.mrf.mxu2 }
 0x340   : > { %v1302_v4 = vadd.f32 %v1301_v1, %v1291_v2 }
 0x342   : > { %v1304_v6 = vmul.f32 %v1303_v3, %v1302_v4 }
 0x344   : > { %1307 = vst.msk [vmem:[%s615_s30] sm:$0x1] %vm1306_vm13, %v1304_v6 }
 0x345   : > { %2095 = shalt.err (!%p2092_p3)
}
 0x346   : > { %1808 = dma.vmem_to_hbm [thread:$0]  (%p2340_p7), %s1320_s14, 16, %s1322_s19, %s1309_s15  }
 0x347   : > { %v1293_v50 = vpop.f32.mrf.mxu2 }
 0x348 PF: > { %s2498_s16 = sld [smem:[#allocation18_spill]]  ;;  %p1828_p5 = pnand %p1537_p11, %p2288_p6 }
 0x34a   : > { %p1829_p9 = pneg %p1828_p5 }
 0x34e   : > { %s1333_s13 = sand.u32 1, %s2498_s16  }
 0x34f   : > { %s1334_s2 = scalar_lea.sflag [#allocation6], %s1333_s13 }
 0x350   : > { %2133 = dma.done.wait (%p1829_p9), %s1334_s2, 16  }
 0x351   : > { %2135 = vsyncadd (%p1829_p9), %s1334_s2, 4294967280  ;;  %s32_s28 = sadd.s32 1, %s2158_s28   ;;  %s2500_s1 = sld [smem:[#allocation20_spill]] }
 0x352   : > { %p29_p2 = scmp.ge.s32.totalorder %s32_s28, 4   ;;  %s2501_s23 = smov %s2142_s24 }
 0x353   : > { %s2502_s24 = smov %s2146_s25  ;;  %s2503_s25 = smov %s2349_s11 }
 0x354   : > { %s2504_s26 = smov %s2154_s27  ;;  %31 = sbr.rel (!%p29_p2) target bundleno = 15 (0xf), region = 159 }
 0x357   : > { %s2505_s27 = smov %s2500_s1 }
 0x359   :  { %1339 = vsyncpa [#allocation5], 1 }
 0x35a   :  { %1341 = vsyncpa [#allocation5 + $0x1], 1 }
 0x35b   :  { %1342 = vsyncpa [#allocation8], 1 }
 0x35c   :  { %1343 = vsyncpa [#allocation11], 1 }
 0x35d   :  { %1344 = vsyncpa [#allocation6], 1 }
 0x35e   :  { %1346 = vsyncpa [#allocation6 + $0x1], 1 }

</bundles_post_ra>
